<compile_context>
chip_gen: v7x
topology: tpu7x:2x2x1
jax: 0.10.0
libtpu: 0.0.40
codegen_flags: <defaults>
</compile_context>

<pallas_src>
import functools

import jax
import jax.numpy as jnp
from jax.experimental import pallas as pl
from jax.experimental.pallas import tpu as pltpu


# --------------------------------------------------------------------------
# small helpers
# --------------------------------------------------------------------------
def _round_up(x, m):
    return ((x + m - 1) // m) * m


@functools.lru_cache(maxsize=1)
def _matmul_tile_config():
    """(tm, tn, tk_cap) per TPU generation.

    v5e and older: 128x128 tiles already saturate the 4x128^2 MXU and the
    scoped-VMEM default is only 16 MiB.  v6e / v7x: 256-wide tiles feed the
    2x256^2 MXU; the K tile is capped so double-buffered bf16 operands stay a
    few MiB (v7x only has 64 MiB of physical VMEM).
    """
    try:
        kind = jax.devices()[0].device_kind.lower()
    except Exception:
        kind = ""
    if any(tag in kind for tag in ("v2", "v3", "v4", "v5")):
        return 128, 128, 1024
    return 256, 256, 2048


def _pick_tk(K, tk_cap):
    """Largest K tile (multiple of 128, <= cap) that minimizes K padding."""
    kb = -(-K // 128)
    capb = max(tk_cap // 128, 1)
    if kb <= capb:
        return kb * 128                      # whole K fits in one tile
    for d in range(capb, 1, -1):
        if kb % d == 0:
            return d * 128                   # exact divisor -> no extra pad
    return tk_cap                            # fall back: pad K up to tk_cap


# --------------------------------------------------------------------------
# Pallas kernels
# --------------------------------------------------------------------------
def _matmul_bias_act_kernel(a_ref, b_ref, bias_ref, o_ref, acc_ref, *, alpha):
    k = pl.program_id(2)

    @pl.when(k == 0)
    def _():
        acc_ref[...] = jnp.zeros_like(acc_ref)

    acc_ref[...] += jnp.dot(a_ref[...], b_ref[...],
                            preferred_element_type=jnp.float32)

    @pl.when(k == pl.num_programs(2) - 1)
    def _():
        y = acc_ref[...] + bias_ref[...]
        if alpha is not None:
            y = jnp.where(y >= 0.0, y, alpha * y)   # LeakyReLU
        o_ref[...] = y.astype(o_ref.dtype)


def _affine_act_kernel(x_ref, s_ref, t_ref, o_ref, *, alpha):
    y = x_ref[...] * s_ref[...] + t_ref[...]
    if alpha is not None:
        y = jnp.where(y >= 0.0, y, alpha * y)       # LeakyReLU
    o_ref[...] = y


def _chan_stats_kernel(x_ref, s_ref, ss_ref):
    @pl.when(pl.program_id(0) == 0)
    def _():
        s_ref[...] = jnp.zeros_like(s_ref)
        ss_ref[...] = jnp.zeros_like(ss_ref)
    x = x_ref[...]
    s_ref[...] += jnp.sum(x, axis=0, keepdims=True)
    ss_ref[...] += jnp.sum(x * x, axis=0, keepdims=True)


# --- reduction kernels: accumulate a (1,128) vector partial in row 0 of the
#     resident (8,128) output block; scalar collapse happens on host. --------
def _rec_sum_kernel(x_ref, y_ref, o_ref, *, use_l1):
    @pl.when(pl.program_id(1) == 0)
    def _():
        o_ref[...] = jnp.zeros_like(o_ref)
    d = x_ref[...] - y_ref[...]
    e = jnp.abs(d) if use_l1 else d * d
    o_ref[0:1, :] += jnp.sum(e, axis=0, keepdims=True)


def _kl_sum_kernel(m_ref, lv_ref, o_ref):
    @pl.when(pl.program_id(1) == 0)
    def _():
        o_ref[...] = jnp.zeros_like(o_ref)
    m = m_ref[...]
    lv = lv_ref[...]
    o_ref[0:1, :] += jnp.sum(m * m + jnp.exp(lv) - 1.0 - lv,
                             axis=0, keepdims=True)


def _sum_kernel(x_ref, o_ref):
    @pl.when(pl.program_id(1) == 0)
    def _():
        o_ref[...] = jnp.zeros_like(o_ref)
    o_ref[0:1, :] += jnp.sum(x_ref[...], axis=0, keepdims=True)


def _hinge_logits_kernel(lr_ref, lf_ref, hr_ref, hf_ref, sr_ref, sf_ref):
    # Fused: hinge terms + raw logit sums (for the logged means) in one pass.
    @pl.when(pl.program_id(1) == 0)
    def _():
        hr_ref[...] = jnp.zeros_like(hr_ref)
        hf_ref[...] = jnp.zeros_like(hf_ref)
        sr_ref[...] = jnp.zeros_like(sr_ref)
        sf_ref[...] = jnp.zeros_like(sf_ref)
    lr = lr_ref[...]
    lf = lf_ref[...]
    hr_ref[0:1, :] += jnp.sum(jnp.maximum(1.0 - lr, 0.0), axis=0, keepdims=True)
    hf_ref[0:1, :] += jnp.sum(jnp.maximum(1.0 + lf, 0.0), axis=0, keepdims=True)
    sr_ref[0:1, :] += jnp.sum(lr, axis=0, keepdims=True)
    sf_ref[0:1, :] += jnp.sum(lf, axis=0, keepdims=True)


# --------------------------------------------------------------------------
# Pallas wrappers
# --------------------------------------------------------------------------
def pallas_matmul_bias_act(a, b, bias, alpha=None):
    """(M,K) @ (K,N) + bias[N] (+ optional LeakyReLU).

    bf16 MXU operands, f32 VMEM accumulator, f32 (M,N) output."""
    M, K = a.shape
    K2, N = b.shape
    assert K == K2
    tm, tn, tk_cap = _matmul_tile_config()
    tm = tm if M >= tm else 128
    tn = tn if N >= tn else 128
    tk = _pick_tk(K, tk_cap)
    Mp = _round_up(M, tm)
    Np = _round_up(N, tn)
    Kp = _round_up(K, tk)

    a_p = jnp.pad(a.astype(jnp.bfloat16), ((0, Mp - M), (0, Kp - K)))
    b_p = jnp.pad(b.astype(jnp.bfloat16), ((0, Kp - K), (0, Np - N)))
    bias_p = jnp.pad(jnp.asarray(bias, jnp.float32), (0, Np - N)).reshape(1, Np)

    grid = (Mp // tm, Np // tn, Kp // tk)
    out = pl.pallas_call(
        functools.partial(_matmul_bias_act_kernel, alpha=alpha),
        out_shape=jax.ShapeDtypeStruct((Mp, Np), jnp.float32),
        grid=grid,
        in_specs=[pl.BlockSpec((tm, tk), lambda i, j, k: (i, k)),
                  pl.BlockSpec((tk, tn), lambda i, j, k: (k, j)),
                  pl.BlockSpec((1, tn), lambda i, j, k: (0, j))],
        out_specs=pl.BlockSpec((tm, tn), lambda i, j, k: (i, j)),
        scratch_shapes=[pltpu.VMEM((tm, tn), jnp.float32)],
        compiler_params=pltpu.CompilerParams(
            dimension_semantics=("parallel", "parallel", "arbitrary"),
            vmem_limit_bytes=64 * 1024 * 1024),
    )(a_p, b_p, bias_p)
    return out[:M, :N]


def pallas_affine_act(x, scale, shift, alpha=None):
    """Per-channel y = x*scale + shift (+ optional LeakyReLU). x: (M, C) f32."""
    M, C = x.shape
    Cp = _round_up(C, 128)
    rb = min(256, _round_up(M, 8))
    Mp = _round_up(M, rb)
    xp = jnp.pad(jnp.asarray(x, jnp.float32), ((0, Mp - M), (0, Cp - C)))
    sp = jnp.pad(jnp.asarray(scale, jnp.float32), (0, Cp - C)).reshape(1, Cp)
    tp = jnp.pad(jnp.asarray(shift, jnp.float32), (0, Cp - C)).reshape(1, Cp)
    out = pl.pallas_call(
        functools.partial(_affine_act_kernel, alpha=alpha),
        out_shape=jax.ShapeDtypeStruct((Mp, Cp), jnp.float32),
        grid=(Mp // rb,),
        in_specs=[pl.BlockSpec((rb, Cp), lambda i: (i, 0)),
                  pl.BlockSpec((1, Cp), lambda i: (0, 0)),
                  pl.BlockSpec((1, Cp), lambda i: (0, 0))],
        out_specs=pl.BlockSpec((rb, Cp), lambda i: (i, 0)),
        compiler_params=pltpu.CompilerParams(
            dimension_semantics=("parallel",)),
    )(xp, sp, tp)
    return out[:M, :C]


def pallas_channel_stats(x):
    """Per-channel sum and sum-of-squares over the rows of (M, C)."""
    M, C = x.shape
    Cp = _round_up(C, 128)
    rb = min(256, _round_up(M, 8))
    Mp = _round_up(M, rb)
    xp = jnp.pad(jnp.asarray(x, jnp.float32), ((0, Mp - M), (0, Cp - C)))
    s, ss = pl.pallas_call(
        _chan_stats_kernel,
        out_shape=(jax.ShapeDtypeStruct((1, Cp), jnp.float32),
                   jax.ShapeDtypeStruct((1, Cp), jnp.float32)),
        grid=(Mp // rb,),
        in_specs=[pl.BlockSpec((rb, Cp), lambda i: (i, 0))],
        out_specs=(pl.BlockSpec((1, Cp), lambda i: (0, 0)),
                   pl.BlockSpec((1, Cp), lambda i: (0, 0))),
        compiler_params=pltpu.CompilerParams(
            dimension_semantics=("arbitrary",)),
    )(xp)
    return s[0, :C], ss[0, :C]


# --- generic scalar reductions over full tensors --------------------------
_MAX_RED_ROWS = 1024      # (1024,128) f32 block = 512 KiB per input per step


def _reduce_plan(n_elems):
    rows = _round_up(max(-(-n_elems // 128), 8), 8)
    if rows > _MAX_RED_ROWS:
        nsplit, block_rows = 2, _MAX_RED_ROWS      # 2 parallel blocks (v7x)
    else:
        nsplit, block_rows = 1, rows
    total_rows = _round_up(rows, nsplit * block_rows)
    steps = total_rows // (nsplit * block_rows)
    return nsplit, block_rows, steps, total_rows


def _flatten_pad(x, pad_value, total_rows):
    x = jnp.asarray(x, jnp.float32).reshape(-1)
    return jnp.pad(x, (0, total_rows * 128 - x.shape[0]),
                   constant_values=pad_value).reshape(total_rows, 128)


def _reduce_call(kernel_fn, arrays, pad_values, n_outputs):
    n = int(arrays[0].size)
    nsplit, block_rows, steps, total_rows = _reduce_plan(n)
    mats = [_flatten_pad(a, pv, total_rows) for a, pv in zip(arrays, pad_values)]

    in_specs = [pl.BlockSpec((block_rows, 128),
                             lambda p, i: (p * steps + i, 0))
                for _ in mats]
    out_shape = [jax.ShapeDtypeStruct((nsplit * 8, 128), jnp.float32)
                 for _ in range(n_outputs)]
    out_specs = [pl.BlockSpec((8, 128), lambda p, i: (p, 0))
                 for _ in range(n_outputs)]
    if n_outputs == 1:
        out_shape, out_specs = out_shape[0], out_specs[0]

    res = pl.pallas_call(
        kernel_fn,
        out_shape=out_shape,
        grid=(nsplit, steps),
        in_specs=in_specs,
        out_specs=out_specs,
        compiler_params=pltpu.CompilerParams(
            dimension_semantics=("parallel", "arbitrary")),
    )(*mats)
    npad = total_rows * 128 - n
    if n_outputs == 1:
        return (jnp.sum(res),), n, npad
    return tuple(jnp.sum(r) for r in res), n, npad


def pallas_rec_sum(x, y, use_l1=True):
    (s,), _, _ = _reduce_call(functools.partial(_rec_sum_kernel, use_l1=use_l1),
                              [x, y], [0.0, 0.0], 1)
    return s


def pallas_kl_sum(mean, logvar):
    # pad 0 contributes 0 + exp(0) - 1 - 0 = 0
    (s,), _, _ = _reduce_call(_kl_sum_kernel, [mean, logvar], [0.0, 0.0], 1)
    return s


def pallas_sum(x):
    (s,), _, _ = _reduce_call(_sum_kernel, [x], [0.0], 1)
    return s


def pallas_hinge_and_logit_sums(logits_real, logits_fake):
    """Fused: sum(relu(1-lr)), sum(relu(1+lf)), sum(lr), sum(lf), count."""
    (hr, hf, sr, sf), n, npad = _reduce_call(
        _hinge_logits_kernel, [logits_real, logits_fake], [1.0, -1.0], 4)
    # pad values 1.0 / -1.0 are hinge-neutral but bias the raw sums; undo.
    sr = sr - 1.0 * npad
    sf = sf + 1.0 * npad
    return hr, hf, sr, sf, n


# --------------------------------------------------------------------------
# Conv3d / BatchNorm3d built on the Pallas kernels (channels-last)
# --------------------------------------------------------------------------
def _im2col_3d_cl(x, ksize, strides, pad):
    """x: (N,D,H,W,C) -> bf16 patches (N*Do*Ho*Wo, kd*kh*kw*C), K order
    (dz,dy,dx,cin) matching `_prep_conv_weight`."""
    N, D, H, W, C = x.shape
    kd, kh, kw = ksize
    sd, sh, sw = strides
    xp = jnp.pad(x, ((0, 0), (pad, pad), (pad, pad), (pad, pad), (0, 0)))
    Do = (D + 2 * pad - kd) // sd + 1
    Ho = (H + 2 * pad - kh) // sh + 1
    Wo = (W + 2 * pad - kw) // sw + 1
    slabs = []
    for dz in range(kd):
        for dy in range(kh):
            for dx in range(kw):
                slabs.append(xp[:,
                                dz:dz + Do * sd:sd,
                                dy:dy + Ho * sh:sh,
                                dx:dx + Wo * sw:sw, :])
    patches = jnp.stack(slabs, axis=4)                    # (N,Do,Ho,Wo,k^3,C)
    patches = patches.reshape(N * Do * Ho * Wo, kd * kh * kw * C)
    return patches.astype(jnp.bfloat16), (Do, Ho, Wo)


def _prep_conv_weight(w):
    """PyTorch (Cout,Cin,kd,kh,kw) -> channels-last (kd*kh*kw*Cin, Cout) bf16."""
    cout = w.shape[0]
    return jnp.transpose(w, (2, 3, 4, 1, 0)).reshape(-1, cout).astype(jnp.bfloat16)


def pallas_batchnorm_lrelu(ymat, gamma, beta, alpha=0.2, eps=1e-5, groups=1):
    """Train-mode BatchNorm3d (batch statistics, biased var) + LeakyReLU on a
    (M, C) channels-last matrix.  `groups` gives independent statistics to
    equal row-groups (used when two discriminator calls are batched together
    so per-call BatchNorm semantics are preserved)."""
    M = ymat.shape[0]
    if groups == 1:
        parts = [ymat]
    else:
        step = M // groups
        parts = [ymat[g * step:(g + 1) * step] for g in range(groups)]
    outs = []
    for part in parts:
        cnt = part.shape[0]
        s, ss = pallas_channel_stats(part)
        mean = s / cnt
        var = jnp.maximum(ss / cnt - mean * mean, 0.0)    # biased, like torch
        scale = gamma / jnp.sqrt(var + eps)
        shift = beta - mean * scale
        outs.append(pallas_affine_act(part, scale, shift, alpha=alpha))
    return outs[0] if groups == 1 else jnp.concatenate(outs, axis=0)


# --------------------------------------------------------------------------
# NLayerDiscriminator3D (PatchGAN) — deterministic weights_init-style params
# --------------------------------------------------------------------------
def init_nlayer_discriminator3d(key, input_nc=3, ndf=64, n_layers=4):
    kw = 3
    keys = iter(jax.random.split(key, 4 * (n_layers + 3)))

    def conv_w(cout, cin):
        return 0.02 * jax.random.normal(next(keys), (cout, cin, kw, kw, kw),
                                        jnp.float32)

    def bn_params(c):
        gamma = 1.0 + 0.02 * jax.random.normal(next(keys), (c,), jnp.float32)
        beta = jnp.zeros((c,), jnp.float32)
        return gamma, beta

    def make_layer(cout, cin, use_bn, stride, alpha):
        return dict(wmat=_prep_conv_weight(conv_w(cout, cin)),
                    bias=jnp.zeros((cout,), jnp.float32),
                    bn=bn_params(cout) if use_bn else None,
                    stride=stride, alpha=alpha, cout=cout)

    layers = [make_layer(ndf, input_nc, False, (2, 2, 2), 0.2)]
    nf_mult = 1
    for n in range(1, n_layers):
        nf_prev, nf_mult = nf_mult, min(2 ** n, 8)
        stride = (2, 2, 2) if n == 1 else (1, 2, 2)
        layers.append(make_layer(ndf * nf_mult, ndf * nf_prev, True, stride, 0.2))
    nf_prev, nf_mult = nf_mult, min(2 ** n_layers, 8)
    layers.append(make_layer(ndf * nf_mult, ndf * nf_prev, True, (1, 1, 1), 0.2))
    layers.append(make_layer(1, ndf * nf_mult, False, (1, 1, 1), None))
    return layers


def discriminator3d_forward(params, x_ncdhw, stat_groups=1):
    """Channels-last end-to-end; returns logits (N, Do, Ho, Wo, 1)."""
    x = jnp.transpose(jnp.asarray(x_ncdhw, jnp.float32), (0, 2, 3, 4, 1))
    for layer in params:
        N = x.shape[0]
        patches, (Do, Ho, Wo) = _im2col_3d_cl(x, (3, 3, 3), layer["stride"], 1)
        fused_alpha = layer["alpha"] if layer["bn"] is None else None
        ymat = pallas_matmul_bias_act(patches, layer["wmat"], layer["bias"],
                                      alpha=fused_alpha)
        if layer["bn"] is not None:
            gamma, beta = layer["bn"]
            ymat = pallas_batchnorm_lrelu(ymat, gamma, beta,
                                          alpha=layer["alpha"],
                                          groups=stat_groups)
        x = ymat.reshape(N, Do, Ho, Wo, layer["cout"])
    return x


# --------------------------------------------------------------------------
# The loss module
# --------------------------------------------------------------------------
def adopt_weight(weight, global_step, threshold=0, value=0.0):
    if global_step < threshold:
        weight = value
    return weight


class DiagonalGaussianPosterior:
    def __init__(self, mean, logvar):
        self.mean = mean
        self.logvar = logvar


class LPIPSWithDiscriminator3DPallas:
    def __init__(self, disc_start, logvar_init=0.0, kl_weight=1.0,
                 pixelloss_weight=1.0, perceptual_weight=1.0,
                 disc_num_layers=4, disc_in_channels=3, disc_factor=1.0,
                 disc_weight=1.0, disc_conditional=False, disc_loss="hinge",
                 wavelet_weight=0.01, loss_type="l1", seed=0):
        assert disc_loss in ["hinge", "vanilla"]
        self.wavelet_weight = wavelet_weight
        self.kl_weight = kl_weight
        self.pixel_weight = pixelloss_weight
        self.perceptual_weight = perceptual_weight
        self.logvar = jnp.asarray(logvar_init, jnp.float32)
        self.discriminator_iter_start = disc_start
        self.disc_factor = disc_factor
        self.discriminator_weight = disc_weight
        self.disc_conditional = disc_conditional
        self.disc_loss_name = disc_loss
        self.use_l1 = (loss_type == "l1")
        self.disc_params = init_nlayer_discriminator3d(
            jax.random.PRNGKey(seed), input_nc=disc_in_channels,
            ndf=64, n_layers=disc_num_layers)

    # ------------------------------------------------------------------
    def forward(self, inputs, reconstructions, posteriors, optimizer_idx,
                global_step, split="train", weights=None, last_layer=None,
                wavelet_coeffs=None, cond=None):
        bs = inputs.shape[0]
        t = inputs.shape[2]

        if optimizer_idx == 0:
            assert weights is None  # TODO(synk): per-element `weights` path not implemented
            numel = inputs.size
            n_frames = bs * t                    # nll_loss.shape[0] after rearrange

            rec_sum = pallas_rec_sum(inputs, reconstructions, use_l1=self.use_l1)
            # TODO(synk): perceptual LPIPS term (pretrained VGG16) omitted here.

            # sum(rec/exp(logvar) + logvar) == rec_sum/exp(logvar) + numel*logvar
            nll_sum = rec_sum / jnp.exp(self.logvar) + self.logvar * numel
            nll_loss = nll_sum / n_frames
            weighted_nll_loss = nll_loss

            kl_sum = pallas_kl_sum(posteriors.mean, posteriors.logvar)
            kl_loss = 0.5 * kl_sum / bs

            if wavelet_coeffs:
                wl_loss = (pallas_rec_sum(wavelet_coeffs[0], wavelet_coeffs[1], True)
                           + pallas_rec_sum(wavelet_coeffs[2], wavelet_coeffs[3], True)) / bs
            else:
                wl_loss = jnp.asarray(0.0, jnp.float32)

            logits_fake = discriminator3d_forward(self.disc_params,
                                                  reconstructions)
            g_loss = -(pallas_sum(logits_fake) / logits_fake.size)

            if global_step >= self.discriminator_iter_start:
                if self.disc_factor > 0.0:
                    # TODO(synk): adaptive weight needs autograd through decoder last_layer.
                    d_weight = jnp.asarray(self.discriminator_weight, jnp.float32)
                else:
                    d_weight = jnp.asarray(1.0, jnp.float32)
            else:
                d_weight = jnp.asarray(0.0, jnp.float32)
                g_loss = jnp.asarray(0.0, jnp.float32)

            disc_factor = adopt_weight(self.disc_factor, global_step,
                                       threshold=self.discriminator_iter_start)
            loss = (weighted_nll_loss + self.kl_weight * kl_loss
                    + d_weight * disc_factor * g_loss
                    + self.wavelet_weight * wl_loss)
            log = {
                f"{split}/total_loss": loss,
                f"{split}/logvar": self.logvar,
                f"{split}/kl_loss": kl_loss,
                f"{split}/nll_loss": nll_loss,
                f"{split}/rec_loss": weighted_nll_loss,
                f"{split}/wl_loss": wl_loss,
                f"{split}/d_weight": d_weight,
                f"{split}/disc_factor": jnp.asarray(disc_factor, jnp.float32),
                f"{split}/g_loss": g_loss,
            }
            return loss, log

        elif optimizer_idx == 1:
            # One fused discriminator pass over [inputs; reconstructions];
            # BatchNorm statistics are still per original call (groups=2).
            both = jnp.concatenate([jnp.asarray(inputs, jnp.float32),
                                    jnp.asarray(reconstructions, jnp.float32)],
                                   axis=0)
            logits = discriminator3d_forward(self.disc_params, both,
                                             stat_groups=2)
            logits_real, logits_fake = logits[:bs], logits[bs:]

            hr, hf, sr, sf, n = pallas_hinge_and_logit_sums(logits_real,
                                                            logits_fake)
            disc_factor = adopt_weight(self.disc_factor, global_step,
                                       threshold=self.discriminator_iter_start)
            if self.disc_loss_name == "hinge":
                d_loss_core = 0.5 * (hr / n + hf / n)
            else:
                # TODO(synk): vanilla (softplus) d-loss computed in plain JAX glue.
                d_loss_core = 0.5 * (jnp.mean(jax.nn.softplus(-logits_real))
                                     + jnp.mean(jax.nn.softplus(logits_fake)))
            d_loss = disc_factor * d_loss_core
            log = {
                f"{split}/disc_loss": d_loss,
                f"{split}/logits_real": sr / n,
                f"{split}/logits_fake": sf / n,
            }
            return d_loss, log


# --------------------------------------------------------------------------
if __name__ == "__main__":
    key = jax.random.PRNGKey(0)
    k1, k2, k3, k4, k5, k6 = jax.random.split(key, 6)

    b, c, t, h, w = 2, 3, 4, 16, 16
    inputs = jax.random.normal(k1, (b, c, t, h, w), jnp.float32)
    reconstructions = inputs + 0.1 * jax.random.normal(k2, (b, c, t, h, w),
                                                       jnp.float32)
    post_mean = jax.random.normal(k3, (b, 4, 2, 4, 4), jnp.float32)
    post_logvar = 0.1 * jax.random.normal(k4, (b, 4, 2, 4, 4), jnp.float32)
    posteriors = DiagonalGaussianPosterior(post_mean, post_logvar)

    # --- quick numerical sanity checks on the two kernel families ---------
    a_chk = jax.random.normal(k5, (96, 200), jnp.float32)
    b_chk = jax.random.normal(k6, (200, 72), jnp.float32)
    bias_chk = jnp.linspace(-1.0, 1.0, 72, dtype=jnp.float32)
    got = pallas_matmul_bias_act(a_chk, b_chk, bias_chk)
    ref = (a_chk.astype(jnp.bfloat16).astype(jnp.float32)
           @ b_chk.astype(jnp.bfloat16).astype(jnp.float32)) + bias_chk
    assert jnp.max(jnp.abs(got - ref)) < 0.35, "matmul kernel mismatch"

    rec_ref = jnp.sum(jnp.abs(inputs - reconstructions))
    rec_got = pallas_rec_sum(inputs, reconstructions, use_l1=True)
    assert jnp.abs(rec_got - rec_ref) < 1e-2 * jnp.maximum(rec_ref, 1.0), \
        "reduction kernel mismatch"

    # --- full forward, both optimizer branches ----------------------------
    model = LPIPSWithDiscriminator3DPallas(disc_start=50, seed=0)

    loss_g, log_g = model.forward(inputs, reconstructions, posteriors,
                                  optimizer_idx=0, global_step=0)
    loss_d, log_d = model.forward(inputs, reconstructions, posteriors,
                                  optimizer_idx=1, global_step=100)

    jax.block_until_ready(loss_g)
    jax.block_until_ready(loss_d)
    assert bool(jnp.isfinite(loss_g)) and bool(jnp.isfinite(loss_d))
    print("KERNEL_OK")
</pallas_src>

<mosaic_0001>
module attributes {stable_mosaic.version = 11 : i64} {
  func.func @_matmul_bias_act_kernel(%arg0: i32, %arg1: i32, %arg2: i32, %arg3: memref<128x256xbf16, #tpu.memory_space<vmem>>, %arg4: memref<256x128xbf16, #tpu.memory_space<vmem>>, %arg5: memref<1x128xf32, #tpu.memory_space<vmem>>, %arg6: memref<128x128xf32, #tpu.memory_space<vmem>>, %arg7: memref<128x128xf32, #tpu.memory_space<vmem>>) attributes {dimension_semantics = [#tpu.dimension_semantics<parallel>, #tpu.dimension_semantics<parallel>, #tpu.dimension_semantics<arbitrary>], iteration_bounds = array<i64: 1, 1, 1>, scalar_prefetch = 0 : i64, scratch_operands = 1 : i64, tpu.core_type = #tpu.core_type<tc>, window_params = [{transform_indices = @transform_0, window_bounds = array<i64: 128, 256>}, {transform_indices = @transform_1, window_bounds = array<i64: 256, 128>}, {transform_indices = @transform_2, window_bounds = array<i64: 1, 128>}, {transform_indices = @transform_3, window_bounds = array<i64: 128, 128>}]} {
    %c0_i32 = arith.constant 0 : i32
    %0 = arith.cmpi eq, %arg2, %c0_i32 : i32
    %1 = arith.extui %0 : i1 to i32
    %c0_i32_0 = arith.constant 0 : i32
    %2 = arith.cmpi ne, %1, %c0_i32_0 : i32
    scf.if %2 {
      %cst_10 = arith.constant 0.000000e+00 : f32
      %12 = vector.broadcast %cst_10 : f32 to vector<128x128xf32>
      %c0_11 = arith.constant 0 : index
      %c0_12 = arith.constant 0 : index
      %13 = vector.load %arg7[%c0_11, %c0_12] : memref<128x128xf32, #tpu.memory_space<vmem>>, vector<128x128xf32>
      tpu.vector_store %arg7[%c0_11, %c0_12], %12 {strides = array<i32>} : memref<128x128xf32, #tpu.memory_space<vmem>>, vector<128x128xf32>,
    } else {
    }
    %c0 = arith.constant 0 : index
    %c0_1 = arith.constant 0 : index
    %3 = vector.load %arg7[%c0, %c0_1] : memref<128x128xf32, #tpu.memory_space<vmem>>, vector<128x128xf32>
    %c0_2 = arith.constant 0 : index
    %c0_3 = arith.constant 0 : index
    %4 = vector.load %arg3[%c0_2, %c0_3] : memref<128x256xbf16, #tpu.memory_space<vmem>>, vector<128x256xbf16>
    %c0_4 = arith.constant 0 : index
    %c0_5 = arith.constant 0 : index
    %5 = vector.load %arg4[%c0_4, %c0_5] : memref<256x128xbf16, #tpu.memory_space<vmem>>, vector<256x128xbf16>
    %cst = arith.constant dense<0.000000e+00> : vector<128x128xf32>
    %6 = tpu.matmul %4, %5, %cst {dimension_numbers = #tpu.dot_dimension_numbers<[1], [0], [0], [1], [0, 0, 1, 1], [], []>} : vector<128x256xbf16>, vector<256x128xbf16>, vector<128x128xf32> -> vector<128x128xf32>
    %7 = arith.addf %3, %6 : vector<128x128xf32>
    %c0_6 = arith.constant 0 : index
    %c0_7 = arith.constant 0 : index
    %8 = vector.load %arg7[%c0_6, %c0_7] : memref<128x128xf32, #tpu.memory_space<vmem>>, vector<128x128xf32>
    tpu.vector_store %arg7[%c0_6, %c0_7], %7 {strides = array<i32>} : memref<128x128xf32, #tpu.memory_space<vmem>>, vector<128x128xf32>,
    %c0_i32_8 = arith.constant 0 : i32
    %9 = arith.cmpi eq, %arg2, %c0_i32_8 : i32
    %10 = arith.extui %9 : i1 to i32
    %c0_i32_9 = arith.constant 0 : i32
    %11 = arith.cmpi ne, %10, %c0_i32_9 : i32
    scf.if %11 {
      %c0_10 = arith.constant 0 : index
      %c0_11 = arith.constant 0 : index
      %12 = vector.load %arg7[%c0_10, %c0_11] : memref<128x128xf32, #tpu.memory_space<vmem>>, vector<128x128xf32>
      %c0_12 = arith.constant 0 : index
      %c0_13 = arith.constant 0 : index
      %13 = vector.load %arg5[%c0_12, %c0_13] : memref<1x128xf32, #tpu.memory_space<vmem>>, vector<1x128xf32>
      %14 = vector.broadcast %13 : vector<1x128xf32> to vector<128x128xf32>
      %15 = arith.addf %12, %14 : vector<128x128xf32>
      %c0_14 = arith.constant 0 : index
      %c0_15 = arith.constant 0 : index
      %16 = vector.load %arg6[%c0_14, %c0_15] : memref<128x128xf32, #tpu.memory_space<vmem>>, vector<128x128xf32>
      tpu.vector_store %arg6[%c0_14, %c0_15], %15 {strides = array<i32>} : memref<128x128xf32, #tpu.memory_space<vmem>>, vector<128x128xf32>,
    } else {
    }
    return
  }
  func.func @transform_0(%arg0: i32, %arg1: i32, %arg2: i32) -> (i32, i32) {
    %c0_i32 = arith.constant 0 : i32
    return %arg0, %arg2 : i32, i32
  }
  func.func @transform_1(%arg0: i32, %arg1: i32, %arg2: i32) -> (i32, i32) {
    %c0_i32 = arith.constant 0 : i32
    return %arg2, %arg1 : i32, i32
  }
  func.func @transform_2(%arg0: i32, %arg1: i32, %arg2: i32) -> (i32, i32) {
    %c0_i32 = arith.constant 0 : i32
    %c0_i32_0 = arith.constant 0 : i32
    return %c0_i32, %arg1 : i32, i32
  }
  func.func @transform_3(%arg0: i32, %arg1: i32, %arg2: i32) -> (i32, i32) {
    %c0_i32 = arith.constant 0 : i32
    return %arg0, %arg1 : i32, i32
  }
}

</mosaic_0001>

<bundles_post_ra>
// kernel: tpu_custom_call.1
= control target key start
LH: loop header
LB: loop body
LE: loop exit
PB: predicated region body
PF: predicated region fallthrough
CT: control target
= control target key end

     0   :  { %8 = vsyncpa [#allocation4], 0  ;;  %s875_s0 = inlined_call_operand.hbm [shape: bf16[128,256], index: 0, kind: input, shape index: {}]   ;;  %s876_s1 = inlined_call_operand.hbm [shape: bf16[256,128], index: 1, kind: input, shape index: {}]   ;;  %s877_s2 = inlined_call_operand.hbm [shape: f32[1,128], index: 2, kind: input, shape index: {}]   ;;  %s878_s3 = inlined_call_operand.hbm [shape: f32[128,128], index: 3, kind: output, shape index: {}]  }
   0x1   :  { %9 = vsyncpa [#allocation7], 0 }
   0x2   :  { %10 = vsyncpa [#allocation5], 0  ;;  %s775_s12 = smov [#allocation6]   ;;  %s681_s16 = scalar_lea.hbm %s876_s1, 2048 }
   0x3   :  { %s28_s13 = sshll.u32 %s775_s12, 4  ;;  %p682_p0 = scmp.ne.s32.totalorder %s876_s1, %s681_s16  ;;  %s29_s13 = int_to_ptr.vmem [resolvable:$true] %s28_s13 }
   0x4   :  { %p685_p1 = scmp.lt.u32.totalorder %s681_s16, %s876_s1 }
   0x6   :  { %p687_p2 = pnand %p685_p1, %p682_p0 }
   0x8   :  { %690 = shalt.err (!%p687_p2)
}
   0x9   :  { %s691_s21 = scalar_lea.vmem %s29_s13, 2048  ;;  %p696_p4 = scmp.lt.s32.totalorder %s29_s13, %s29_s13 }
   0xa   :  { %p692_p3 = scmp.ne.s32.totalorder %s29_s13, %s691_s21  ;;  %p697_p5 = scmp.lt.s32.totalorder %s691_s21, %s691_s21 }
   0xc   :  { %p698_p6 = por %p697_p5, %p696_p4 }
   0xe   :  { %p699_p7 = pnand %p698_p6, %p692_p3 }
  0x10   :  { %702 = shalt.err (!%p699_p7)
}
  0x11   :  { %s776_s22 = smov 64   ;;  %s777_s23 = smov 4  }
  0x12   :  { %34 = dma.hbm_to_vmem [thread:$0]  %s876_s1, 2048, %s29_s13, [#allocation7], %s776_s22, %s776_s22, %s777_s23  }
  0x13   :  { %s778_s26 = smov [#allocation3]   ;;  %s703_s30 = scalar_lea.hbm %s875_s0, 2048 }
  0x14   :  { %s16_s27 = sshll.u32 %s778_s26, 4  ;;  %p704_p8 = scmp.ne.s32.totalorder %s875_s0, %s703_s30  ;;  %s17_s27 = int_to_ptr.vmem [resolvable:$true] %s16_s27 }
  0x15   :  { %p707_p9 = scmp.lt.u32.totalorder %s703_s30, %s875_s0 }
  0x17   :  { %p709_p10 = pnand %p707_p9, %p704_p8 }
  0x19   :  { %712 = shalt.err (!%p709_p10)
}
  0x1a   :  { %s713_s8 = scalar_lea.vmem %s17_s27, 2048  ;;  %p718_p12 = scmp.lt.s32.totalorder %s17_s27, %s17_s27 }
  0x1b   :  { %p714_p11 = scmp.ne.s32.totalorder %s17_s27, %s713_s8  ;;  %p719_p13 = scmp.lt.s32.totalorder %s713_s8, %s713_s8 }
  0x1d   :  { %p720_p0 = por %p719_p13, %p718_p12 }
  0x1f   :  { %p721_p1 = pnand %p720_p0, %p714_p11 }
  0x21   :  { %724 = shalt.err (!%p721_p1)
}
  0x22   :  { %s779_s1 = smov 128   ;;  %s780_s9 = smov 8  }
  0x23   :  { %22 = dma.hbm_to_vmem [thread:$0]  %s875_s0, 2048, %s17_s27, [#allocation4], %s779_s1, %s779_s1, %s780_s9  }
  0x24   :  { %s781_s12 = smov [#allocation8]   ;;  %s725_s16 = scalar_lea.hbm %s877_s2, 16 }
  0x25   :  { %s41_s13 = sshll.u32 %s781_s12, 4  ;;  %p726_p2 = scmp.ne.s32.totalorder %s877_s2, %s725_s16  ;;  %s42_s13 = int_to_ptr.vmem [resolvable:$true] %s41_s13 }
  0x26   :  { %p729_p3 = scmp.lt.u32.totalorder %s725_s16, %s877_s2 }
  0x28   :  { %p731_p4 = pnand %p729_p3, %p726_p2 }
  0x2a   :  { %734 = shalt.err (!%p731_p4)
}
  0x2b   :  { %s735_s21 = scalar_lea.vmem %s42_s13, 16  ;;  %s739_s0 = scalar_lea.vmem %s42_s13, 32 }
  0x2c   :  { %p736_p5 = scmp.ne.s32.totalorder %s42_s13, %s735_s21  ;;  %p740_p6 = scmp.lt.s32.totalorder %s42_s13, %s42_s13 }
  0x2d   :  { %p741_p7 = scmp.lt.s32.totalorder %s739_s0, %s735_s21 }
  0x2f   :  { %p742_p8 = por %p741_p7, %p740_p6 }
  0x31   :  { %p743_p9 = pnand %p742_p8, %p736_p5 }
  0x33   :  { %746 = shalt.err (!%p743_p9)
}
  0x34   :  { %44 = dma.hbm_to_vmem [thread:$0]  %s877_s2, 16, %s42_s13, [#allocation7]  }
  0x35   :  { %769 = dma.done.wait [#allocation4], 2048  }
  0x36   :  { %770 = vsyncadd [#allocation4], 4294965248 }
  0x37   :  { %771 = dma.done.wait [#allocation7], 2064  }
  0x38   :  { %772 = vsyncadd [#allocation7], 4294965232  ;;  %v641_v0 = vld [vmem:[#allocation6 + $0x40] sm:$0xff]   ;;  %v643_v2 = vld [vmem:[#allocation6 + $0x48] sm:$0xff]   ;;  %s782_s2 = smov [#allocation9]  }
  0x39   :  { %v642_v1 = vld [vmem:[#allocation6] sm:$0xff]   ;;  %553 = vmatprep.subr.bf16.mxu0 %v641_v0  ;;  %617 = vmatprep.subr.bf16.mxu1 %v641_v0  ;;  %v644_v3 = vld [vmem:[#allocation6 + $0x8] sm:$0xff]   ;;  %v645_v4 = vld [vmem:[#allocation6 + $0x50] sm:$0xff]   ;;  %s507_s24 = sshll.u32 %s782_s2, 4  ;;  %s508_s24 = int_to_ptr.vmem [resolvable:$true] %s507_s24 }
  0x3a   :  { %554 = vmatpush3.bf16.msra.mxu0 %v642_v1  ;;  %625 = vmatpush3.bf16.msra.mxu1 %v642_v1  ;;  %v646_v5 = vld [vmem:[#allocation6 + $0x10] sm:$0xff]   ;;  %v647_v6 = vld [vmem:[#allocation6 + $0x58] sm:$0xff]   ;;  %v649_v8 = vld [vmem:[#allocation6 + $0x60] sm:$0xff]   ;;  %s747_s25 = scalar_lea.vmem %s508_s24, 2048  ;;  %p752_p11 = scmp.lt.s32.totalorder %s508_s24, %s508_s24 }
  0x3b   :  { %555 = vmatprep.subr.bf16.mxu0 %v643_v2  ;;  %618 = vmatprep.subr.bf16.mxu1 %v643_v2  ;;  %v648_v7 = vld [vmem:[#allocation6 + $0x18] sm:$0xff]   ;;  %v650_v9 = vld [vmem:[#allocation6 + $0x20] sm:$0xff]   ;;  %v651_v10 = vld [vmem:[#allocation6 + $0x68] sm:$0xff]   ;;  %p748_p10 = scmp.ne.s32.totalorder %s508_s24, %s747_s25  ;;  %p753_p12 = scmp.lt.s32.totalorder %s747_s25, %s747_s25 }
  0x3c   :  { %v659_v11 = vld [vmem:[#allocation3 + $0x4] ss:$8 sps:$4 sm:$0xff]   ;;  %v653_v14 = vld [vmem:[#allocation6 + $0x70] sm:$0xff]   ;;  %v655_v16 = vld [vmem:[#allocation6 + $0x78] sm:$0xff]  }
  0x3d   :  { %v662_v12 = vld [vmem:[#allocation3 + $0x44] ss:$8 sps:$4 sm:$0xff]   ;;  %347 = vmatprep.mubr.bf16.mxu0 %v659_v11  ;;  %v654_v15 = vld [vmem:[#allocation6 + $0x30] sm:$0xff]   ;;  %v656_v17 = vld [vmem:[#allocation6 + $0x38] sm:$0xff]   ;;  %p754_p13 = por %p753_p12, %p752_p11 }
  0x3e   :  { %556 = vmatpush3.bf16.msra.mxu0 %v644_v3  ;;  %626 = vmatpush3.bf16.msra.mxu1 %v644_v3  ;;  %v652_v13 = vld [vmem:[#allocation6 + $0x28] sm:$0xff]   ;;  %v663_v20 = vld [vmem:[#allocation3 + $0x14] ss:$8 sps:$4 sm:$0xff]   ;;  %v667_v22 = vld [vmem:[#allocation3 + $0x10] ss:$8 sps:$4 sm:$0xff]  }
  0x3f   :  { %557 = vmatprep.subr.bf16.mxu0 %v645_v4  ;;  %619 = vmatprep.subr.bf16.mxu1 %v645_v4  ;;  %v657_v18 = vld [vmem:[#allocation3] ss:$8 sps:$4 sm:$0xff]   ;;  %v665_v21 = vld [vmem:[#allocation3 + $0x54] ss:$8 sps:$4 sm:$0xff]   ;;  %v668_v23 = vld [vmem:[#allocation3 + $0x50] ss:$8 sps:$4 sm:$0xff]   ;;  %p755_p0 = pnand %p754_p13, %p748_p10 }
  0x40   :  { %379 = vmatprep.mubr.bf16.mxu1 %v662_v12  ;;  %v660_v19 = vld [vmem:[#allocation3 + $0x40] ss:$8 sps:$4 sm:$0xff]   ;;  %v669_v24 = vld [vmem:[#allocation3 + $0x24] ss:$8 sps:$4 sm:$0xff]   ;;  %v675_v28 = vld [vmem:[#allocation3 + $0x34] ss:$8 sps:$4 sm:$0xff]  }
  0x41   :  { %v671_v25 = vld [vmem:[#allocation3 + $0x64] ss:$8 sps:$4 sm:$0xff]   ;;  %v673_v26 = vld [vmem:[#allocation3 + $0x20] ss:$8 sps:$4 sm:$0xff]   ;;  %v677_v29 = vld [vmem:[#allocation3 + $0x74] ss:$8 sps:$4 sm:$0xff]  }
  0x42   :  { %558 = vmatpush3.bf16.msra.mxu0 %v646_v5  ;;  %627 = vmatpush3.bf16.msra.mxu1 %v646_v5  ;;  %v674_v27 = vld [vmem:[#allocation3 + $0x60] ss:$8 sps:$4 sm:$0xff]   ;;  %v679_v30 = vld [vmem:[#allocation3 + $0x30] ss:$8 sps:$4 sm:$0xff]  }
  0x43   :  { %559 = vmatprep.subr.bf16.mxu0 %v647_v6  ;;  %620 = vmatprep.subr.bf16.mxu1 %v647_v6  ;;  %v680_v31 = vld [vmem:[#allocation3 + $0x70] ss:$8 sps:$4 sm:$0xff]   ;;  %v842_v35 = vld [vmem:[#allocation8] ss:$0 sm:$0xff] }
  0x46   :  { %560 = vmatpush3.bf16.msra.mxu0 %v648_v7  ;;  %628 = vmatpush3.bf16.msra.mxu1 %v648_v7 }
  0x47   :  { %561 = vmatprep.subr.bf16.mxu0 %v649_v8  ;;  %621 = vmatprep.subr.bf16.mxu1 %v649_v8 }
  0x4a   :  { %562 = vmatpush3.bf16.msra.mxu0 %v650_v9  ;;  %629 = vmatpush3.bf16.msra.mxu1 %v650_v9 }
  0x4b   :  { %563 = vmatprep.subr.bf16.mxu0 %v651_v10  ;;  %622 = vmatprep.subr.bf16.mxu1 %v651_v10 }
  0x4e   :  { %564 = vmatpush3.bf16.msra.mxu0 %v652_v13  ;;  %630 = vmatpush3.bf16.msra.mxu1 %v652_v13 }
  0x4f   :  { %565 = vmatprep.subr.bf16.mxu0 %v653_v14  ;;  %623 = vmatprep.subr.bf16.mxu1 %v653_v14 }
  0x52   :  { %566 = vmatpush3.bf16.msra.mxu0 %v654_v15  ;;  %631 = vmatpush3.bf16.msra.mxu1 %v654_v15 }
  0x53   :  { %567 = vmatprep.subr.bf16.mxu0 %v655_v16  ;;  %624 = vmatprep.subr.bf16.mxu1 %v655_v16 }
  0x56   :  { %568 = vmatpush3.bf16.msra.mxu0 %v656_v17  ;;  %632 = vmatpush3.bf16.msra.mxu1 %v656_v17 }
  0x59   :  { %348 = vmatmul.mubr.bf16.vlgmr.msra.gmra.mrb[0].mxu0 %v657_v18  ;;  %380 = vmatmul.mubr.bf16.vlgmr.msra.gmra.mrb[0].mxu1 %v660_v19 }
  0x5a   :  { %355 = vmatprep.mubr.bf16.mxu0 %v663_v20  ;;  %387 = vmatprep.mubr.bf16.mxu1 %v665_v21 }
  0x61   :  { %356 = vmatmul.mubr.bf16.gmra.mrb[4].mxu0 %v667_v22  ;;  %388 = vmatmul.mubr.bf16.gmra.mrb[4].mxu1 %v668_v23 }
  0x62   :  { %363 = vmatprep.mubr.bf16.mxu0 %v669_v24  ;;  %395 = vmatprep.mubr.bf16.mxu1 %v671_v25 }
  0x69   :  { %364 = vmatmul.mubr.bf16.gmra.mrb[8].mxu0 %v673_v26  ;;  %396 = vmatmul.mubr.bf16.gmra.mrb[8].mxu1 %v674_v27 }
  0x6a   :  { %371 = vmatprep.mubr.bf16.mxu0 %v675_v28  ;;  %403 = vmatprep.mubr.bf16.mxu1 %v677_v29 }
  0x71   :  { %372 = vmatmul.mubr.bf16.gmra.mrb[12].mxu0 %v679_v30  ;;  %404 = vmatmul.mubr.bf16.gmra.mrb[12].mxu1 %v680_v31 }
 0x12c   :  { %v569_v32 = vpop.f32.mrb[0].mxu0  ;;  %v593_v33 = vpop.f32.mrb[0].mxu1 }
 0x12d   :  { %v570_v34 = vpop.f32.mrb[1].mxu0  ;;  %v594_v36 = vpop.f32.mrb[1].mxu1 }
 0x12e   :  { %v571_v37 = vadd.f32 %v570_v34, %v569_v32  ;;  %v595_v38 = vadd.f32 %v594_v36, %v593_v33  ;;  %v572_v39 = vpop.f32.mrb[2].mxu0  ;;  %v596_v40 = vpop.f32.mrb[2].mxu1 }
 0x12f   :  { %v573_v41 = vpop.f32.mrb[3].mxu0  ;;  %v597_v42 = vpop.f32.mrb[3].mxu1 }
 0x130   :  { %v470_v43 = vadd.f32 %v571_v37, %v842_v35  ;;  %v478_v44 = vadd.f32 %v595_v38, %v842_v35  ;;  %v574_v45 = vadd.f32 %v573_v41, %v572_v39  ;;  %v598_v46 = vadd.f32 %v597_v42, %v596_v40 }
 0x132   :  { %486 = vst [vmem:[#allocation9] sm:$0xff] %v470_v43  ;;  %494 = vst [vmem:[#allocation9 + $0x40] sm:$0xff] %v478_v44  ;;  %v471_v47 = vadd.f32 %v574_v45, %v842_v35  ;;  %v479_v48 = vadd.f32 %v598_v46, %v842_v35 }
 0x134   :  { %487 = vst [vmem:[#allocation9 + $0x8] sm:$0xff] %v471_v47  ;;  %495 = vst [vmem:[#allocation9 + $0x48] sm:$0xff] %v479_v48  ;;  %v575_v49 = vpop.f32.mrb[4].mxu0  ;;  %v599_v50 = vpop.f32.mrb[4].mxu1 }
 0x135   :  { %v576_v51 = vpop.f32.mrb[5].mxu0  ;;  %v600_v52 = vpop.f32.mrb[5].mxu1 }
 0x136   :  { %v577_v53 = vadd.f32 %v576_v51, %v575_v49  ;;  %v601_v54 = vadd.f32 %v600_v52, %v599_v50  ;;  %v578_v55 = vpop.f32.mrb[6].mxu0  ;;  %v602_v56 = vpop.f32.mrb[6].mxu1 }
 0x137   :  { %v579_v57 = vpop.f32.mrb[7].mxu0  ;;  %v603_v58 = vpop.f32.mrb[7].mxu1 }
 0x138   :  { %v472_v59 = vadd.f32 %v577_v53, %v842_v35  ;;  %v480_v60 = vadd.f32 %v601_v54, %v842_v35  ;;  %v580_v61 = vadd.f32 %v579_v57, %v578_v55  ;;  %v604_v62 = vadd.f32 %v603_v58, %v602_v56 }
 0x13a   :  { %488 = vst [vmem:[#allocation9 + $0x10] sm:$0xff] %v472_v59  ;;  %496 = vst [vmem:[#allocation9 + $0x50] sm:$0xff] %v480_v60  ;;  %v473_v63 = vadd.f32 %v580_v61, %v842_v35  ;;  %v481_v0 = vadd.f32 %v604_v62, %v842_v35 }
 0x13c   :  { %489 = vst [vmem:[#allocation9 + $0x18] sm:$0xff] %v473_v63  ;;  %497 = vst [vmem:[#allocation9 + $0x58] sm:$0xff] %v481_v0  ;;  %v581_v1 = vpop.f32.mrb[8].mxu0  ;;  %v605_v2 = vpop.f32.mrb[8].mxu1 }
 0x13d   :  { %v582_v3 = vpop.f32.mrb[9].mxu0  ;;  %v606_v4 = vpop.f32.mrb[9].mxu1 }
 0x13e   :  { %v583_v5 = vadd.f32 %v582_v3, %v581_v1  ;;  %v607_v6 = vadd.f32 %v606_v4, %v605_v2  ;;  %v584_v7 = vpop.f32.mrb[10].mxu0  ;;  %v608_v8 = vpop.f32.mrb[10].mxu1 }
 0x13f   :  { %v585_v9 = vpop.f32.mrb[11].mxu0  ;;  %v609_v10 = vpop.f32.mrb[11].mxu1 }
 0x140   :  { %v474_v11 = vadd.f32 %v583_v5, %v842_v35  ;;  %v482_v12 = vadd.f32 %v607_v6, %v842_v35  ;;  %v586_v13 = vadd.f32 %v585_v9, %v584_v7  ;;  %v610_v14 = vadd.f32 %v609_v10, %v608_v8 }
 0x142   :  { %490 = vst [vmem:[#allocation9 + $0x20] sm:$0xff] %v474_v11  ;;  %498 = vst [vmem:[#allocation9 + $0x60] sm:$0xff] %v482_v12  ;;  %v475_v15 = vadd.f32 %v586_v13, %v842_v35  ;;  %v483_v16 = vadd.f32 %v610_v14, %v842_v35 }
 0x144   :  { %491 = vst [vmem:[#allocation9 + $0x28] sm:$0xff] %v475_v15  ;;  %499 = vst [vmem:[#allocation9 + $0x68] sm:$0xff] %v483_v16  ;;  %v587_v17 = vpop.f32.mrb[12].mxu0  ;;  %v611_v18 = vpop.f32.mrb[12].mxu1 }
 0x145   :  { %v588_v19 = vpop.f32.mrb[13].mxu0  ;;  %v612_v20 = vpop.f32.mrb[13].mxu1 }
 0x146   :  { %v589_v21 = vadd.f32 %v588_v19, %v587_v17  ;;  %v613_v22 = vadd.f32 %v612_v20, %v611_v18  ;;  %v590_v23 = vpop.f32.mrb[14].mxu0  ;;  %v614_v24 = vpop.f32.mrb[14].mxu1 }
 0x147   :  { %v591_v25 = vpop.f32.mrb[15].mxu0  ;;  %v615_v26 = vpop.f32.mrb[15].mxu1 }
 0x148   :  { %v476_v27 = vadd.f32 %v589_v21, %v842_v35  ;;  %v484_v28 = vadd.f32 %v613_v22, %v842_v35  ;;  %v592_v29 = vadd.f32 %v591_v25, %v590_v23  ;;  %v616_v30 = vadd.f32 %v615_v26, %v614_v24 }
 0x14a   :  { %492 = vst [vmem:[#allocation9 + $0x30] sm:$0xff] %v476_v27  ;;  %500 = vst [vmem:[#allocation9 + $0x70] sm:$0xff] %v484_v28  ;;  %v477_v31 = vadd.f32 %v592_v29, %v842_v35  ;;  %v485_v32 = vadd.f32 %v616_v30, %v842_v35 }
 0x14c   :  { %493 = vst [vmem:[#allocation9 + $0x38] sm:$0xff] %v477_v31  ;;  %501 = vst [vmem:[#allocation9 + $0x78] sm:$0xff] %v485_v32 }
 0x14d   :  { %758 = shalt.err (!%p755_p0)
}
 0x14e   :  { %s759_s28 = scalar_lea.hbm %s878_s3, 2048 }
 0x14f   :  { %p760_p1 = scmp.ne.s32.totalorder %s878_s3, %s759_s28  ;;  %p763_p2 = scmp.lt.u32.totalorder %s759_s28, %s878_s3 }
 0x151   :  { %p765_p3 = pnand %p763_p2, %p760_p1 }
 0x153   :  { %768 = shalt.err (!%p765_p3)
}
 0x154   :  { %513 = dma.vmem_to_hbm [thread:$0]  %s508_s24, 2048, %s878_s3, [#allocation5], %s779_s1, %s779_s1, %s780_s9  }
 0x155   :  { %773 = dma.done.wait [#allocation5], 2048  }
 0x156   :  { %774 = vsyncadd [#allocation5], 4294965248 }
 0x157   :  { %517 = vsyncpa [#allocation4], 1 }
 0x158   :  { %518 = vsyncpa [#allocation7], 1 }
 0x159   :  { %519 = vsyncpa [#allocation5], 1 }

</bundles_post_ra>
